<compile_context>
chip_gen: v6e
topology: v6e:2x2x1
jax: 0.10.0
libtpu: 0.0.40
codegen_flags: <defaults>
</compile_context>

<pallas_src>
import functools

import numpy as np
import jax
import jax.numpy as jnp
from jax.experimental import pallas as pl
from jax.experimental.pallas import tpu as pltpu


def _round_up(a: int, b: int) -> int:
    return ((a + b - 1) // b) * b


def build_pe_table(d_model: int, max_len: int = 5000, dtype=jnp.float32) -> jnp.ndarray:
    """Init-time buffer construction (same math as the PyTorch __init__).

    Build ONCE in the model dtype so the forward never has to slice or cast it.
    Returns shape (max_len, 1, d_model)."""
    assert d_model % 2 == 0, "d_model must be even (same limitation as the torch original)"
    position = np.arange(0, max_len, dtype=np.float32)[:, None]              # (max_len, 1)
    div_term = np.exp(
        np.arange(0, d_model, 2, dtype=np.float32) * (-np.log(10000.0) / d_model)
    )                                                                         # (d_model//2,)
    pe = np.zeros((max_len, d_model), dtype=np.float32)
    pe[:, 0::2] = np.sin(position * div_term)
    pe[:, 1::2] = np.cos(position * div_term)
    return jnp.asarray(pe[:, None, :], dtype=dtype)                           # (max_len, 1, D)


def _pe_add_flat_kernel(x_ref, pe_ref, o_ref, *, batch: int):
    # x block: (tile_s, B*D); pe block: (tile_s, D).  Tile pe B times along the
    # lane axis (explicit lane concat — cheap, and fully hidden under HBM DMAs).
    pe = pe_ref[...]
    if batch > 1:
        pe = jnp.concatenate([pe] * batch, axis=-1)
    o_ref[...] = x_ref[...] + pe


def _pe_add_3d_kernel(x_ref, pe_ref, o_ref):
    # x block: (tile_s, tile_b, D); pe block: (tile_s, 1, D) broadcasts over batch.
    o_ref[...] = x_ref[...] + pe_ref[...]


def positional_encoding_forward(
    x: jnp.ndarray,
    pe: jnp.ndarray,
    *,
    tile_s: int | None = None,
    tile_b: int | None = None,
    target_block_bytes: int = 2 * 1024 * 1024,   # safe on v5e default scoped VMEM; bump (with
                                                 # vmem_limit_bytes) on v7x for bigger blocks
    vmem_limit_bytes: int | None = None,
    donate_x: bool = False,
) -> jnp.ndarray:
    """x: (S, B, D); pe: (max_len, 1, D) — pass the full registered buffer.
    Returns x + pe[:S] (broadcast over B)."""
    S, B, D = x.shape
    max_len = pe.shape[0]
    if S > max_len:
        raise ValueError(f"sequence length {S} exceeds positional-encoding max_len {max_len}")
    if pe.dtype != x.dtype:
        # No-op when pe was built in the model dtype at init (preferred).
        pe = pe.astype(x.dtype)

    itemsize = jnp.dtype(x.dtype).itemsize
    granule = max(1, (8 * 4) // itemsize)   # sublane rows per packed 32-bit group: 8 f32 / 16 bf16 / 32 int8

    compiler_kwargs = {}
    if vmem_limit_bytes is not None:
        compiler_kwargs["vmem_limit_bytes"] = vmem_limit_bytes

    call_kwargs = {}
    if donate_x:
        # Only beneficial when the caller actually donates x (no later use of it).
        call_kwargs["input_output_aliases"] = {0: 0}

    # ---- Small-batch fast path: dense sublane layout via (S, B*D) bitcast reshape ----
    if B < granule:
        row_bytes = B * D * itemsize   # dense, no padding in this layout
        ts = tile_s if tile_s is not None else max(1, target_block_bytes // max(1, row_bytes))
        ts = min(ts, _round_up(S, granule))
        ts = max(granule, (ts // granule) * granule)          # sublane block dim constraint
        if tile_s is None and S > granule and pl.cdiv(S, ts) == 1:
            ts = _round_up(pl.cdiv(S, 2), granule)            # >= 2 blocks for megacore balance

        x_flat = x.reshape(S, B * D)          # contiguous merge of trailing dims -> free bitcast
        pe_2d = pe.reshape(max_len, D)        # squeeze size-1 dim -> free bitcast

        out = pl.pallas_call(
            functools.partial(_pe_add_flat_kernel, batch=B),
            out_shape=jax.ShapeDtypeStruct((S, B * D), x.dtype),
            grid=(pl.cdiv(S, ts),),
            in_specs=[
                pl.BlockSpec((ts, B * D), lambda i: (i, 0)),
                pl.BlockSpec((ts, D), lambda i: (i, 0)),      # only blocks covering rows < S are fetched
            ],
            out_specs=pl.BlockSpec((ts, B * D), lambda i: (i, 0)),
            compiler_params=pltpu.CompilerParams(
                dimension_semantics=("parallel",), **compiler_kwargs),
            **call_kwargs,
        )(x_flat, pe_2d)
        return out.reshape(S, B, D)

    # ---- General path: batch is already sublane-dense (B >= granule) ----
    if tile_b is None or tile_b >= B:
        tb = B
    else:
        tb = min(B, _round_up(max(1, tile_b), granule))       # keep the sublane block dim legal

    # True (padded) VMEM footprint of one S row: (tb -> granule-padded, D -> 128-padded).
    row_bytes = _round_up(tb, granule) * _round_up(D, 128) * itemsize
    ts = tile_s if tile_s is not None else max(1, target_block_bytes // max(1, row_bytes))
    ts = max(1, min(ts, S))
    if tile_s is None and S > 1 and pl.cdiv(S, ts) == 1:
        ts = pl.cdiv(S, 2)                                    # >= 2 S blocks for megacore balance

    if tb == B:
        grid = (pl.cdiv(S, ts),)
        in_specs = [
            pl.BlockSpec((ts, B, D), lambda i: (i, 0, 0)),
            pl.BlockSpec((ts, 1, D), lambda i: (i, 0, 0)),
        ]
        out_specs = pl.BlockSpec((ts, B, D), lambda i: (i, 0, 0))
        semantics = ("parallel",)
    else:
        grid = (pl.cdiv(S, ts), pl.cdiv(B, tb))               # S outer, B inner -> pe block resident
        in_specs = [
            pl.BlockSpec((ts, tb, D), lambda i, j: (i, j, 0)),
            pl.BlockSpec((ts, 1, D), lambda i, j: (i, 0, 0)),
        ]
        out_specs = pl.BlockSpec((ts, tb, D), lambda i, j: (i, j, 0))
        semantics = ("parallel", "parallel")

    return pl.pallas_call(
        _pe_add_3d_kernel,
        out_shape=jax.ShapeDtypeStruct((S, B, D), x.dtype),
        grid=grid,
        in_specs=in_specs,
        out_specs=out_specs,
        compiler_params=pltpu.CompilerParams(dimension_semantics=semantics, **compiler_kwargs),
        **call_kwargs,
    )(x, pe)


if __name__ == "__main__":
    # Shapes consistent with the module: seq=8, batch=2, d_model=32 (small-batch flat path).
    S, B, D = 8, 2, 32
    MAX_LEN = 64  # the module's default 5000 is just the table size

    pe = build_pe_table(D, MAX_LEN, dtype=jnp.float32)
    key = jax.random.PRNGKey(0)
    k1, k2 = jax.random.split(key)

    x = jax.random.normal(k1, (S, B, D), dtype=jnp.float32)
    out = jax.block_until_ready(positional_encoding_forward(x, pe))
    ref = x + pe[:S]
    np.testing.assert_allclose(np.asarray(out), np.asarray(ref), rtol=1e-6, atol=1e-6)

    # Also exercise the general (B >= sublane granule) 3-D path at a small, aligned shape.
    S2, B2, D2 = 16, 8, 128
    pe2 = build_pe_table(D2, MAX_LEN, dtype=jnp.float32)
    x2 = jax.random.normal(k2, (S2, B2, D2), dtype=jnp.float32)
    out2 = jax.block_until_ready(positional_encoding_forward(x2, pe2))
    ref2 = x2 + pe2[:S2]
    np.testing.assert_allclose(np.asarray(out2), np.asarray(ref2), rtol=1e-6, atol=1e-6)

    print("KERNEL_OK")
</pallas_src>

<mosaic_0001>
module attributes {stable_mosaic.version = 11 : i64} {
  func.func @_pe_add_flat_kernel(%arg0: i32, %arg1: memref<8x64xf32, #tpu.memory_space<vmem>>, %arg2: memref<8x32xf32, #tpu.memory_space<vmem>>, %arg3: memref<8x64xf32, #tpu.memory_space<vmem>>) attributes {dimension_semantics = [#tpu.dimension_semantics<parallel>], iteration_bounds = array<i64: 1>, scalar_prefetch = 0 : i64, scratch_operands = 0 : i64, tpu.core_type = #tpu.core_type<tc>, window_params = [{transform_indices = @transform_0, window_bounds = array<i64: 8, 64>}, {transform_indices = @transform_1, window_bounds = array<i64: 8, 32>}, {transform_indices = @transform_2, window_bounds = array<i64: 8, 64>}]} {
    %c0 = arith.constant 0 : index
    %c0_0 = arith.constant 0 : index
    %0 = vector.load %arg2[%c0, %c0_0] : memref<8x32xf32, #tpu.memory_space<vmem>>, vector<8x32xf32>
    %1 = tpu.concatenate %0, %0 in 1 : vector<8x32xf32>, vector<8x32xf32> -> vector<8x64xf32>
    %c0_1 = arith.constant 0 : index
    %c0_2 = arith.constant 0 : index
    %2 = vector.load %arg1[%c0_1, %c0_2] : memref<8x64xf32, #tpu.memory_space<vmem>>, vector<8x64xf32>
    %3 = arith.addf %2, %1 : vector<8x64xf32>
    %c0_3 = arith.constant 0 : index
    %c0_4 = arith.constant 0 : index
    %4 = vector.load %arg3[%c0_3, %c0_4] : memref<8x64xf32, #tpu.memory_space<vmem>>, vector<8x64xf32>
    tpu.vector_store %arg3[%c0_3, %c0_4], %3 {strides = array<i32>} : memref<8x64xf32, #tpu.memory_space<vmem>>, vector<8x64xf32>,
    return
  }
  func.func @transform_0(%arg0: i32) -> (i32, i32) {
    %c0_i32 = arith.constant 0 : i32
    %c0_i32_0 = arith.constant 0 : i32
    return %arg0, %c0_i32 : i32, i32
  }
  func.func @transform_1(%arg0: i32) -> (i32, i32) {
    %c0_i32 = arith.constant 0 : i32
    %c0_i32_0 = arith.constant 0 : i32
    return %arg0, %c0_i32 : i32, i32
  }
  func.func @transform_2(%arg0: i32) -> (i32, i32) {
    %c0_i32 = arith.constant 0 : i32
    %c0_i32_0 = arith.constant 0 : i32
    return %arg0, %c0_i32 : i32, i32
  }
}

</mosaic_0001>

<bundles_post_ra>
// kernel: tpu_custom_call.1
= control target key start
LH: loop header
LB: loop body
LE: loop exit
PB: predicated region body
PF: predicated region fallthrough
CT: control target
= control target key end

     0   :  { %s87_s0 = inlined_call_operand.vmem [shape: f32[8,64], index: 0, kind: input, shape index: {}]   ;;  %s88_s1 = inlined_call_operand.vmem [shape: f32[64,32], index: 1, kind: input, shape index: {}]   ;;  %s89_s2 = inlined_call_operand.hbm [shape: f32[8,64], index: 2, kind: output, shape index: {}]  }
   0x1   :  { %v12_v0 = vld [vmem:[%s88_s1] sm:$0xff] }
   0x2   :  { %7 = vsyncpa [#allocation3], 0  ;;  %s61_s11 = smov 32   ;;  %vm17_vm0 = vcmask 261120   ;;  %v19_v1 = vld [vmem:[%s87_s0] sm:$0xff]  ;;  %s62_s14 = smov [#allocation2]  }
   0x3   :  { %14 = vrot.lane.b32.xlu0 %v12_v0, %s61_s11  ;;  %s29_s15 = sshll.u32 %s62_s14, 4  ;;  %vm21_vm1 = vcmask 523264   ;;  %s30_s15 = int_to_ptr.vmem [resolvable:$true] %s29_s15 }
   0x4   :  { %s39_s16 = scalar_lea.vmem %s30_s15, 128  ;;  %p44_p1 = scmp.lt.s32.totalorder %s30_s15, %s30_s15 }
   0x5   :  { %p40_p0 = scmp.ne.s32.totalorder %s30_s15, %s39_s16  ;;  %p45_p2 = scmp.lt.s32.totalorder %s39_s16, %s39_s16 }
   0x7   :  { %p46_p3 = por %p45_p2, %p44_p1 }
   0x9   :  { %p47_p4 = pnand %p46_p3, %p40_p0 }
  0x75   :  { %v15_v2 = vpop.permute.xlu0 %14 }
  0x76   :  { %v18_v3 = vsel %vm17_vm0, %v12_v0, %v15_v2 }
  0x77   :  { %v20_v4 = vadd.f32 %v19_v1, %v18_v3 }
  0x79   :  { %22 = vst.msk [vmem:[#allocation2] sm:$0xff] %vm21_vm1, %v20_v4 }
  0x7a   :  { %50 = shalt.err (!%p47_p4)
}
  0x7b   :  { %32 = dma.vmem_to_hbm [thread:$0]  %s30_s15, 128, %s89_s2, [#allocation3]  }
  0x7c   :  { %59 = dma.done.wait [#allocation3], 128  }
  0x7d   :  { %60 = vsyncadd [#allocation3], 4294967168 }
  0x7e   :  { %36 = vsyncpa [#allocation3], 1 }

</bundles_post_ra>
